<compile_context>
chip_gen: v7x
topology: tpu7x:2x2x1
jax: 0.10.0
libtpu: 0.0.40
codegen_flags: <defaults>
</compile_context>

<pallas_src>
import jax
import jax.numpy as jnp
from jax import lax
from jax.experimental import pallas as pl
from jax.experimental.pallas import tpu as pltpu

INPUT = 3
HIDDEN = 64


def lstm_recurrence_kernel(gx_ref, whh_ref, hs_ref, h_scr, c_scr):
    # gx_ref:  (S_chunk, BB, 4H) bf16 — x @ W_ih^T + (b_ih + b_hh), gate order
    #                                    [i, f, o, 2*g] (g pre-scaled by 2).
    # whh_ref: (H, 4H)           bf16 — W_hh^T in the same packed gate order.
    # hs_ref:  (S_chunk, BB, H)  f32  — per-step hidden states (lane-dense).
    # h_scr:   (BB, H) bf16 scratch   — recurrent h (already the MXU operand dtype).
    # c_scr:   (BB, H) f32  scratch   — recurrent c.
    S_chunk = gx_ref.shape[0]
    H = whh_ref.shape[0]

    # h/c carry across the sequence-chunk ("arbitrary") grid axis.
    @pl.when(pl.program_id(1) == 0)
    def _():
        h_scr[...] = jnp.zeros_like(h_scr)
        c_scr[...] = jnp.zeros_like(c_scr)

    def step(t, carry):
        # Only the recurrent matmul + activations sit on the serial path.
        gates = gx_ref[t].astype(jnp.float32) + jnp.dot(
            h_scr[...], whh_ref[...], preferred_element_type=jnp.float32)

        # One sigmoid over all 4H columns (two full 128-lane vregs);
        # tanh(g) recovered as 2*sigmoid(2g) - 1 (g columns were pre-scaled).
        s_all = jax.nn.sigmoid(gates)                        # (BB, 4H) f32
        i_g = s_all[:, 0 * H:1 * H]
        f_g = s_all[:, 1 * H:2 * H]
        o_g = s_all[:, 2 * H:3 * H]
        g_g = 2.0 * s_all[:, 3 * H:4 * H] - 1.0

        c_new = f_g * c_scr[...] + i_g * g_g
        h_new = o_g * jnp.tanh(c_new)

        c_scr[...] = c_new
        h_scr[...] = h_new.astype(h_scr.dtype)               # bf16 for next matmul
        hs_ref[t] = h_new.astype(hs_ref.dtype)
        return carry

    # Short chunks: full unroll so the LLO scheduler can overlap the hs store /
    # o-gate tail of step t with the MXU push of step t+1.  Longer chunks use a
    # bounded unroll to avoid code-size / vreg-spill blowup.
    unroll = True if S_chunk <= 16 else 8
    lax.fori_loop(0, S_chunk, step, 0, unroll=unroll)


def _pack_gates(w_ih, w_hh, b_ih, b_hh):
    """Repack PyTorch [i, f, g, o] gate blocks into [i, f, o, 2*g].

    The factor 2 on the g block lets the kernel use tanh(g) = 2*sigmoid(2g) - 1,
    i.e. a single sigmoid pass over all four gates.
    """
    H = w_hh.shape[1]

    def repack(m):
        i, f, g, o = m[0:H], m[H:2 * H], m[2 * H:3 * H], m[3 * H:4 * H]
        return jnp.concatenate([i, f, o, 2.0 * g], axis=0)

    return repack(w_ih), repack(w_hh), repack(b_ih + b_hh)


def lstm_model_forward(x, w_ih, w_hh, b_ih, b_hh, w_lin, b_lin, *,
                       batch_block=16, seq_block=8):
    """x: (S, B, INPUT) float32 -> (S, B, 1) float32."""
    S, B, _ = x.shape
    H = w_hh.shape[1]

    w_ih_p, w_hh_p, bias_p = _pack_gates(w_ih, w_hh, b_ih, b_hh)

    # Padding (padded rows / steps are sliced off before the output Linear).
    # batch_block is kept a multiple of 16 so bf16 blocks stay tile-aligned.
    B_pad = ((B + batch_block - 1) // batch_block) * batch_block
    S_pad = ((S + seq_block - 1) // seq_block) * seq_block
    if B_pad != B:
        x = jnp.pad(x, ((0, 0), (0, B_pad - B), (0, 0)))

    # Hoisted non-recurrent input projection (f32 accumulate, bias folded in),
    # then downcast to bf16: gx is the dominant HBM read / largest VMEM block.
    gates_x = (jnp.einsum("sbi,gi->sbg", x, w_ih_p,
                          precision=lax.Precision.HIGHEST)
               + bias_p).astype(jnp.bfloat16)                # (S, B_pad, 4H)
    if S_pad != S:
        gates_x = jnp.pad(gates_x, ((0, S_pad - S), (0, 0), (0, 0)))

    whh_t = jnp.transpose(w_hh_p).astype(jnp.bfloat16)       # (H, 4H) bf16

    n_b_blocks = B_pad // batch_block
    n_s_chunks = S_pad // seq_block

    hs = pl.pallas_call(
        lstm_recurrence_kernel,
        out_shape=jax.ShapeDtypeStruct((S_pad, B_pad, H), jnp.float32),
        grid_spec=pltpu.PrefetchScalarGridSpec(
            num_scalar_prefetch=0,
            grid=(n_b_blocks, n_s_chunks),
            in_specs=[
                pl.BlockSpec((seq_block, batch_block, 4 * H),
                             lambda b, s: (s, b, 0)),
                pl.BlockSpec((H, 4 * H), lambda b, s: (0, 0)),
            ],
            out_specs=pl.BlockSpec((seq_block, batch_block, H),
                                   lambda b, s: (s, b, 0)),
            scratch_shapes=[
                pltpu.VMEM((batch_block, H), jnp.bfloat16),  # recurrent h
                pltpu.VMEM((batch_block, H), jnp.float32),   # recurrent c
            ]),
        compiler_params=pltpu.CompilerParams(
            # Batch blocks are independent (megacore-shardable on v7x); the
            # sequence-chunk axis carries h/c state and must stay serial.
            dimension_semantics=("parallel", "arbitrary")),
    )(gates_x, whh_t)

    # Hoisted output Linear on the valid (unpadded) rows/steps.
    # TODO(synk): for batch_block >= 128, fuse this 64->1 projection into the
    # kernel as a lane reduction to avoid the (S, B, H) f32 HBM round-trip.
    hs = hs[:S, :B, :]
    return hs @ jnp.transpose(w_lin) + b_lin                  # (S, B, 1)


def reference_forward(x, w_ih, w_hh, b_ih, b_hh, w_lin, b_lin):
    """Pure-JAX f32 reference (PyTorch LSTM semantics) for a sanity check."""
    S, B, _ = x.shape
    H = w_hh.shape[1]

    def step(carry, x_t):
        h, c = carry
        gates = x_t @ w_ih.T + b_ih + h @ w_hh.T + b_hh
        i = jax.nn.sigmoid(gates[:, 0 * H:1 * H])
        f = jax.nn.sigmoid(gates[:, 1 * H:2 * H])
        g = jnp.tanh(gates[:, 2 * H:3 * H])
        o = jax.nn.sigmoid(gates[:, 3 * H:4 * H])
        c = f * c + i * g
        h = o * jnp.tanh(c)
        return (h, c), h

    init = (jnp.zeros((B, H), jnp.float32), jnp.zeros((B, H), jnp.float32))
    _, hs = lax.scan(step, init, x)
    return hs @ w_lin.T + b_lin


if __name__ == "__main__":
    key = jax.random.PRNGKey(0)
    ks = jax.random.split(key, 7)

    seq, batch = 8, 4
    H, I = HIDDEN, INPUT
    bound = 1.0 / jnp.sqrt(jnp.float32(H))

    # Deterministic synthetic parameters (shapes match nn.LSTM(3, 64) / nn.Linear(64, 1)).
    w_ih = jax.random.uniform(ks[0], (4 * H, I), jnp.float32, -bound, bound)
    w_hh = jax.random.uniform(ks[1], (4 * H, H), jnp.float32, -bound, bound)
    b_ih = jax.random.uniform(ks[2], (4 * H,), jnp.float32, -bound, bound)
    b_hh = jax.random.uniform(ks[3], (4 * H,), jnp.float32, -bound, bound)
    w_lin = jax.random.uniform(ks[4], (1, H), jnp.float32, -bound, bound)
    b_lin = jax.random.uniform(ks[5], (1,), jnp.float32, -bound, bound)

    x = jax.random.normal(ks[6], (seq, batch, I), jnp.float32)

    # seq_block=4 -> two sequence chunks, exercising the cross-chunk h/c carry.
    out = lstm_model_forward(x, w_ih, w_hh, b_ih, b_hh, w_lin, b_lin,
                             batch_block=16, seq_block=4)
    out = jax.block_until_ready(out)

    ref = reference_forward(x, w_ih, w_hh, b_ih, b_hh, w_lin, b_lin)
    assert out.shape == (seq, batch, 1), out.shape
    # Tolerance reflects the bf16 recurrent-h feedback and bf16 gx shipping
    # (f32 accumulation everywhere); at S=8 the observed error is well inside.
    err = float(jnp.max(jnp.abs(out - ref)))
    assert jnp.allclose(out, ref, atol=2e-2, rtol=2e-2), err

    print("KERNEL_OK")
</pallas_src>

<mosaic_0001>
module attributes {stable_mosaic.version = 11 : i64} {
  func.func @lstm_recurrence_kernel(%arg0: i32, %arg1: i32, %arg2: memref<4x16x256xbf16, #tpu.memory_space<vmem>>, %arg3: memref<64x256xbf16, #tpu.memory_space<vmem>>, %arg4: memref<4x16x64xf32, #tpu.memory_space<vmem>>, %arg5: memref<16x64xbf16, #tpu.memory_space<vmem>>, %arg6: memref<16x64xf32, #tpu.memory_space<vmem>>) attributes {dimension_semantics = [#tpu.dimension_semantics<parallel>, #tpu.dimension_semantics<arbitrary>], iteration_bounds = array<i64: 1, 2>, scalar_prefetch = 0 : i64, scratch_operands = 2 : i64, tpu.core_type = #tpu.core_type<tc>, window_params = [{transform_indices = @transform_0, window_bounds = array<i64: 4, 16, 256>}, {pipeline_mode = #tpu.pipeline_mode<synchronous>, transform_indices = @transform_1, window_bounds = array<i64: 64, 256>}, {transform_indices = @transform_2, window_bounds = array<i64: 4, 16, 64>}]} {
    %c0_i32 = arith.constant 0 : i32
    %0 = arith.cmpi eq, %arg1, %c0_i32 : i32
    %1 = arith.extui %0 : i1 to i32
    %c0_i32_0 = arith.constant 0 : i32
    %2 = arith.cmpi ne, %1, %c0_i32_0 : i32
    scf.if %2 {
      %cst_72 = arith.constant 0.000000e+00 : bf16
      %139 = vector.broadcast %cst_72 : bf16 to vector<16x64xbf16>
      %c0_73 = arith.constant 0 : index
      %c0_74 = arith.constant 0 : index
      %140 = vector.load %arg5[%c0_73, %c0_74] : memref<16x64xbf16, #tpu.memory_space<vmem>>, vector<16x64xbf16>
      tpu.vector_store %arg5[%c0_73, %c0_74], %139 {strides = array<i32>} : memref<16x64xbf16, #tpu.memory_space<vmem>>, vector<16x64xbf16>,
      %cst_75 = arith.constant 0.000000e+00 : f32
      %141 = vector.broadcast %cst_75 : f32 to vector<16x64xf32>
      %c0_76 = arith.constant 0 : index
      %c0_77 = arith.constant 0 : index
      %142 = vector.load %arg6[%c0_76, %c0_77] : memref<16x64xf32, #tpu.memory_space<vmem>>, vector<16x64xf32>
      tpu.vector_store %arg6[%c0_76, %c0_77], %141 {strides = array<i32>} : memref<16x64xf32, #tpu.memory_space<vmem>>, vector<16x64xf32>,
    } else {
    }
    %c0_i32_1 = arith.constant 0 : i32
    %3 = arith.index_cast %c0_i32_1 : i32 to index
    %c0 = arith.constant 0 : index
    %c0_2 = arith.constant 0 : index
    %4 = vector.load %arg2[%3, %c0, %c0_2] : memref<4x16x256xbf16, #tpu.memory_space<vmem>>, vector<1x16x256xbf16>
    %5 = vector.shape_cast %4 : vector<1x16x256xbf16> to vector<16x256xbf16>
    %6 = arith.extf %5 : vector<16x256xbf16> to vector<16x256xf32>
    %c0_3 = arith.constant 0 : index
    %c0_4 = arith.constant 0 : index
    %7 = vector.load %arg5[%c0_3, %c0_4] : memref<16x64xbf16, #tpu.memory_space<vmem>>, vector<16x64xbf16>
    %c0_5 = arith.constant 0 : index
    %c0_6 = arith.constant 0 : index
    %8 = vector.load %arg3[%c0_5, %c0_6] : memref<64x256xbf16, #tpu.memory_space<vmem>>, vector<64x256xbf16>
    %cst = arith.constant dense<0.000000e+00> : vector<16x256xf32>
    %9 = tpu.matmul %7, %8, %cst {dimension_numbers = #tpu.dot_dimension_numbers<[1], [0], [0], [1], [0, 0, 1, 1], [], []>} : vector<16x64xbf16>, vector<64x256xbf16>, vector<16x256xf32> -> vector<16x256xf32>
    %10 = arith.addf %6, %9 : vector<16x256xf32>
    %11 = arith.negf %10 : vector<16x256xf32>
    %12 = math.exp %11 : vector<16x256xf32>
    %cst_7 = arith.constant 1.000000e+00 : f32
    %13 = vector.broadcast %cst_7 : f32 to vector<16x256xf32>
    %14 = arith.addf %13, %12 : vector<16x256xf32>
    %15 = arith.divf %13, %14 : vector<16x256xf32>
    %16 = vector.extract_strided_slice %15 {offsets = [0, 0], sizes = [16, 64], strides = [1, 1]} : vector<16x256xf32> to vector<16x64xf32>
    %17 = vector.extract_strided_slice %15 {offsets = [0, 64], sizes = [16, 64], strides = [1, 1]} : vector<16x256xf32> to vector<16x64xf32>
    %18 = vector.extract_strided_slice %15 {offsets = [0, 128], sizes = [16, 64], strides = [1, 1]} : vector<16x256xf32> to vector<16x64xf32>
    %19 = vector.extract_strided_slice %15 {offsets = [0, 192], sizes = [16, 64], strides = [1, 1]} : vector<16x256xf32> to vector<16x64xf32>
    %cst_8 = arith.constant 2.000000e+00 : f32
    %20 = vector.broadcast %cst_8 : f32 to vector<16x64xf32>
    %21 = arith.mulf %20, %19 : vector<16x64xf32>
    %cst_9 = arith.constant 1.000000e+00 : f32
    %22 = vector.broadcast %cst_9 : f32 to vector<16x64xf32>
    %23 = arith.subf %21, %22 : vector<16x64xf32>
    %c0_10 = arith.constant 0 : index
    %c0_11 = arith.constant 0 : index
    %24 = vector.load %arg6[%c0_10, %c0_11] : memref<16x64xf32, #tpu.memory_space<vmem>>, vector<16x64xf32>
    %25 = arith.mulf %17, %24 : vector<16x64xf32>
    %26 = arith.mulf %16, %23 : vector<16x64xf32>
    %27 = arith.addf %25, %26 : vector<16x64xf32>
    %28 = math.tanh %27 : vector<16x64xf32>
    %29 = arith.mulf %18, %28 : vector<16x64xf32>
    %c0_12 = arith.constant 0 : index
    %c0_13 = arith.constant 0 : index
    %30 = vector.load %arg6[%c0_12, %c0_13] : memref<16x64xf32, #tpu.memory_space<vmem>>, vector<16x64xf32>
    tpu.vector_store %arg6[%c0_12, %c0_13], %27 {strides = array<i32>} : memref<16x64xf32, #tpu.memory_space<vmem>>, vector<16x64xf32>,
    %31 = arith.truncf %29 : vector<16x64xf32> to vector<16x64xbf16>
    %c0_14 = arith.constant 0 : index
    %c0_15 = arith.constant 0 : index
    %32 = vector.load %arg5[%c0_14, %c0_15] : memref<16x64xbf16, #tpu.memory_space<vmem>>, vector<16x64xbf16>
    tpu.vector_store %arg5[%c0_14, %c0_15], %31 {strides = array<i32>} : memref<16x64xbf16, #tpu.memory_space<vmem>>, vector<16x64xbf16>,
    %33 = arith.index_cast %c0_i32_1 : i32 to index
    %c0_16 = arith.constant 0 : index
    %c0_17 = arith.constant 0 : index
    %34 = vector.load %arg4[%33, %c0_16, %c0_17] : memref<4x16x64xf32, #tpu.memory_space<vmem>>, vector<1x16x64xf32>
    %35 = vector.shape_cast %34 : vector<1x16x64xf32> to vector<16x64xf32>
    %36 = vector.shape_cast %29 : vector<16x64xf32> to vector<1x16x64xf32>
    tpu.vector_store %arg4[%33, %c0_16, %c0_17], %36 {strides = array<i32>} : memref<4x16x64xf32, #tpu.memory_space<vmem>>, vector<1x16x64xf32>,
    %c1_i32 = arith.constant 1 : i32
    %37 = arith.index_cast %c1_i32 : i32 to index
    %c0_18 = arith.constant 0 : index
    %c0_19 = arith.constant 0 : index
    %38 = vector.load %arg2[%37, %c0_18, %c0_19] : memref<4x16x256xbf16, #tpu.memory_space<vmem>>, vector<1x16x256xbf16>
    %39 = vector.shape_cast %38 : vector<1x16x256xbf16> to vector<16x256xbf16>
    %40 = arith.extf %39 : vector<16x256xbf16> to vector<16x256xf32>
    %c0_20 = arith.constant 0 : index
    %c0_21 = arith.constant 0 : index
    %41 = vector.load %arg5[%c0_20, %c0_21] : memref<16x64xbf16, #tpu.memory_space<vmem>>, vector<16x64xbf16>
    %c0_22 = arith.constant 0 : index
    %c0_23 = arith.constant 0 : index
    %42 = vector.load %arg3[%c0_22, %c0_23] : memref<64x256xbf16, #tpu.memory_space<vmem>>, vector<64x256xbf16>
    %cst_24 = arith.constant dense<0.000000e+00> : vector<16x256xf32>
    %43 = tpu.matmul %41, %42, %cst_24 {dimension_numbers = #tpu.dot_dimension_numbers<[1], [0], [0], [1], [0, 0, 1, 1], [], []>} : vector<16x64xbf16>, vector<64x256xbf16>, vector<16x256xf32> -> vector<16x256xf32>
    %44 = arith.addf %40, %43 : vector<16x256xf32>
    %45 = arith.negf %44 : vector<16x256xf32>
    %46 = math.exp %45 : vector<16x256xf32>
    %cst_25 = arith.constant 1.000000e+00 : f32
    %47 = vector.broadcast %cst_25 : f32 to vector<16x256xf32>
    %48 = arith.addf %47, %46 : vector<16x256xf32>
    %49 = arith.divf %47, %48 : vector<16x256xf32>
    %50 = vector.extract_strided_slice %49 {offsets = [0, 0], sizes = [16, 64], strides = [1, 1]} : vector<16x256xf32> to vector<16x64xf32>
    %51 = vector.extract_strided_slice %49 {offsets = [0, 64], sizes = [16, 64], strides = [1, 1]} : vector<16x256xf32> to vector<16x64xf32>
    %52 = vector.extract_strided_slice %49 {offsets = [0, 128], sizes = [16, 64], strides = [1, 1]} : vector<16x256xf32> to vector<16x64xf32>
    %53 = vector.extract_strided_slice %49 {offsets = [0, 192], sizes = [16, 64], strides = [1, 1]} : vector<16x256xf32> to vector<16x64xf32>
    %cst_26 = arith.constant 2.000000e+00 : f32
    %54 = vector.broadcast %cst_26 : f32 to vector<16x64xf32>
    %55 = arith.mulf %54, %53 : vector<16x64xf32>
    %cst_27 = arith.constant 1.000000e+00 : f32
    %56 = vector.broadcast %cst_27 : f32 to vector<16x64xf32>
    %57 = arith.subf %55, %56 : vector<16x64xf32>
    %c0_28 = arith.constant 0 : index
    %c0_29 = arith.constant 0 : index
    %58 = vector.load %arg6[%c0_28, %c0_29] : memref<16x64xf32, #tpu.memory_space<vmem>>, vector<16x64xf32>
    %59 = arith.mulf %51, %58 : vector<16x64xf32>
    %60 = arith.mulf %50, %57 : vector<16x64xf32>
    %61 = arith.addf %59, %60 : vector<16x64xf32>
    %62 = math.tanh %61 : vector<16x64xf32>
    %63 = arith.mulf %52, %62 : vector<16x64xf32>
    %c0_30 = arith.constant 0 : index
    %c0_31 = arith.constant 0 : index
    %64 = vector.load %arg6[%c0_30, %c0_31] : memref<16x64xf32, #tpu.memory_space<vmem>>, vector<16x64xf32>
    tpu.vector_store %arg6[%c0_30, %c0_31], %61 {strides = array<i32>} : memref<16x64xf32, #tpu.memory_space<vmem>>, vector<16x64xf32>,
    %65 = arith.truncf %63 : vector<16x64xf32> to vector<16x64xbf16>
    %c0_32 = arith.constant 0 : index
    %c0_33 = arith.constant 0 : index
    %66 = vector.load %arg5[%c0_32, %c0_33] : memref<16x64xbf16, #tpu.memory_space<vmem>>, vector<16x64xbf16>
    tpu.vector_store %arg5[%c0_32, %c0_33], %65 {strides = array<i32>} : memref<16x64xbf16, #tpu.memory_space<vmem>>, vector<16x64xbf16>,
    %67 = arith.index_cast %c1_i32 : i32 to index
    %c0_34 = arith.constant 0 : index
    %c0_35 = arith.constant 0 : index
    %68 = vector.load %arg4[%67, %c0_34, %c0_35] : memref<4x16x64xf32, #tpu.memory_space<vmem>>, vector<1x16x64xf32>
    %69 = vector.shape_cast %68 : vector<1x16x64xf32> to vector<16x64xf32>
    %70 = vector.shape_cast %63 : vector<16x64xf32> to vector<1x16x64xf32>
    tpu.vector_store %arg4[%67, %c0_34, %c0_35], %70 {strides = array<i32>} : memref<4x16x64xf32, #tpu.memory_space<vmem>>, vector<1x16x64xf32>,
    %c2_i32 = arith.constant 2 : i32
    %71 = arith.index_cast %c2_i32 : i32 to index
    %c0_36 = arith.constant 0 : index
    %c0_37 = arith.constant 0 : index
    %72 = vector.load %arg2[%71, %c0_36, %c0_37] : memref<4x16x256xbf16, #tpu.memory_space<vmem>>, vector<1x16x256xbf16>
    %73 = vector.shape_cast %72 : vector<1x16x256xbf16> to vector<16x256xbf16>
    %74 = arith.extf %73 : vector<16x256xbf16> to vector<16x256xf32>
    %c0_38 = arith.constant 0 : index
    %c0_39 = arith.constant 0 : index
    %75 = vector.load %arg5[%c0_38, %c0_39] : memref<16x64xbf16, #tpu.memory_space<vmem>>, vector<16x64xbf16>
    %c0_40 = arith.constant 0 : index
    %c0_41 = arith.constant 0 : index
    %76 = vector.load %arg3[%c0_40, %c0_41] : memref<64x256xbf16, #tpu.memory_space<vmem>>, vector<64x256xbf16>
    %cst_42 = arith.constant dense<0.000000e+00> : vector<16x256xf32>
    %77 = tpu.matmul %75, %76, %cst_42 {dimension_numbers = #tpu.dot_dimension_numbers<[1], [0], [0], [1], [0, 0, 1, 1], [], []>} : vector<16x64xbf16>, vector<64x256xbf16>, vector<16x256xf32> -> vector<16x256xf32>
    %78 = arith.addf %74, %77 : vector<16x256xf32>
    %79 = arith.negf %78 : vector<16x256xf32>
    %80 = math.exp %79 : vector<16x256xf32>
    %cst_43 = arith.constant 1.000000e+00 : f32
    %81 = vector.broadcast %cst_43 : f32 to vector<16x256xf32>
    %82 = arith.addf %81, %80 : vector<16x256xf32>
    %83 = arith.divf %81, %82 : vector<16x256xf32>
    %84 = vector.extract_strided_slice %83 {offsets = [0, 0], sizes = [16, 64], strides = [1, 1]} : vector<16x256xf32> to vector<16x64xf32>
    %85 = vector.extract_strided_slice %83 {offsets = [0, 64], sizes = [16, 64], strides = [1, 1]} : vector<16x256xf32> to vector<16x64xf32>
    %86 = vector.extract_strided_slice %83 {offsets = [0, 128], sizes = [16, 64], strides = [1, 1]} : vector<16x256xf32> to vector<16x64xf32>
    %87 = vector.extract_strided_slice %83 {offsets = [0, 192], sizes = [16, 64], strides = [1, 1]} : vector<16x256xf32> to vector<16x64xf32>
    %cst_44 = arith.constant 2.000000e+00 : f32
    %88 = vector.broadcast %cst_44 : f32 to vector<16x64xf32>
    %89 = arith.mulf %88, %87 : vector<16x64xf32>
    %cst_45 = arith.constant 1.000000e+00 : f32
    %90 = vector.broadcast %cst_45 : f32 to vector<16x64xf32>
    %91 = arith.subf %89, %90 : vector<16x64xf32>
    %c0_46 = arith.constant 0 : index
    %c0_47 = arith.constant 0 : index
    %92 = vector.load %arg6[%c0_46, %c0_47] : memref<16x64xf32, #tpu.memory_space<vmem>>, vector<16x64xf32>
    %93 = arith.mulf %85, %92 : vector<16x64xf32>
    %94 = arith.mulf %84, %91 : vector<16x64xf32>
    %95 = arith.addf %93, %94 : vector<16x64xf32>
    %96 = math.tanh %95 : vector<16x64xf32>
    %97 = arith.mulf %86, %96 : vector<16x64xf32>
    %c0_48 = arith.constant 0 : index
    %c0_49 = arith.constant 0 : index
    %98 = vector.load %arg6[%c0_48, %c0_49] : memref<16x64xf32, #tpu.memory_space<vmem>>, vector<16x64xf32>
    tpu.vector_store %arg6[%c0_48, %c0_49], %95 {strides = array<i32>} : memref<16x64xf32, #tpu.memory_space<vmem>>, vector<16x64xf32>,
    %99 = arith.truncf %97 : vector<16x64xf32> to vector<16x64xbf16>
    %c0_50 = arith.constant 0 : index
    %c0_51 = arith.constant 0 : index
    %100 = vector.load %arg5[%c0_50, %c0_51] : memref<16x64xbf16, #tpu.memory_space<vmem>>, vector<16x64xbf16>
    tpu.vector_store %arg5[%c0_50, %c0_51], %99 {strides = array<i32>} : memref<16x64xbf16, #tpu.memory_space<vmem>>, vector<16x64xbf16>,
    %101 = arith.index_cast %c2_i32 : i32 to index
    %c0_52 = arith.constant 0 : index
    %c0_53 = arith.constant 0 : index
    %102 = vector.load %arg4[%101, %c0_52, %c0_53] : memref<4x16x64xf32, #tpu.memory_space<vmem>>, vector<1x16x64xf32>
    %103 = vector.shape_cast %102 : vector<1x16x64xf32> to vector<16x64xf32>
    %104 = vector.shape_cast %97 : vector<16x64xf32> to vector<1x16x64xf32>
    tpu.vector_store %arg4[%101, %c0_52, %c0_53], %104 {strides = array<i32>} : memref<4x16x64xf32, #tpu.memory_space<vmem>>, vector<1x16x64xf32>,
    %c3_i32 = arith.constant 3 : i32
    %105 = arith.index_cast %c3_i32 : i32 to index
    %c0_54 = arith.constant 0 : index
    %c0_55 = arith.constant 0 : index
    %106 = vector.load %arg2[%105, %c0_54, %c0_55] : memref<4x16x256xbf16, #tpu.memory_space<vmem>>, vector<1x16x256xbf16>
    %107 = vector.shape_cast %106 : vector<1x16x256xbf16> to vector<16x256xbf16>
    %108 = arith.extf %107 : vector<16x256xbf16> to vector<16x256xf32>
    %c0_56 = arith.constant 0 : index
    %c0_57 = arith.constant 0 : index
    %109 = vector.load %arg5[%c0_56, %c0_57] : memref<16x64xbf16, #tpu.memory_space<vmem>>, vector<16x64xbf16>
    %c0_58 = arith.constant 0 : index
    %c0_59 = arith.constant 0 : index
    %110 = vector.load %arg3[%c0_58, %c0_59] : memref<64x256xbf16, #tpu.memory_space<vmem>>, vector<64x256xbf16>
    %cst_60 = arith.constant dense<0.000000e+00> : vector<16x256xf32>
    %111 = tpu.matmul %109, %110, %cst_60 {dimension_numbers = #tpu.dot_dimension_numbers<[1], [0], [0], [1], [0, 0, 1, 1], [], []>} : vector<16x64xbf16>, vector<64x256xbf16>, vector<16x256xf32> -> vector<16x256xf32>
    %112 = arith.addf %108, %111 : vector<16x256xf32>
    %113 = arith.negf %112 : vector<16x256xf32>
    %114 = math.exp %113 : vector<16x256xf32>
    %cst_61 = arith.constant 1.000000e+00 : f32
    %115 = vector.broadcast %cst_61 : f32 to vector<16x256xf32>
    %116 = arith.addf %115, %114 : vector<16x256xf32>
    %117 = arith.divf %115, %116 : vector<16x256xf32>
    %118 = vector.extract_strided_slice %117 {offsets = [0, 0], sizes = [16, 64], strides = [1, 1]} : vector<16x256xf32> to vector<16x64xf32>
    %119 = vector.extract_strided_slice %117 {offsets = [0, 64], sizes = [16, 64], strides = [1, 1]} : vector<16x256xf32> to vector<16x64xf32>
    %120 = vector.extract_strided_slice %117 {offsets = [0, 128], sizes = [16, 64], strides = [1, 1]} : vector<16x256xf32> to vector<16x64xf32>
    %121 = vector.extract_strided_slice %117 {offsets = [0, 192], sizes = [16, 64], strides = [1, 1]} : vector<16x256xf32> to vector<16x64xf32>
    %cst_62 = arith.constant 2.000000e+00 : f32
    %122 = vector.broadcast %cst_62 : f32 to vector<16x64xf32>
    %123 = arith.mulf %122, %121 : vector<16x64xf32>
    %cst_63 = arith.constant 1.000000e+00 : f32
    %124 = vector.broadcast %cst_63 : f32 to vector<16x64xf32>
    %125 = arith.subf %123, %124 : vector<16x64xf32>
    %c0_64 = arith.constant 0 : index
    %c0_65 = arith.constant 0 : index
    %126 = vector.load %arg6[%c0_64, %c0_65] : memref<16x64xf32, #tpu.memory_space<vmem>>, vector<16x64xf32>
    %127 = arith.mulf %119, %126 : vector<16x64xf32>
    %128 = arith.mulf %118, %125 : vector<16x64xf32>
    %129 = arith.addf %127, %128 : vector<16x64xf32>
    %130 = math.tanh %129 : vector<16x64xf32>
    %131 = arith.mulf %120, %130 : vector<16x64xf32>
    %c0_66 = arith.constant 0 : index
    %c0_67 = arith.constant 0 : index
    %132 = vector.load %arg6[%c0_66, %c0_67] : memref<16x64xf32, #tpu.memory_space<vmem>>, vector<16x64xf32>
    tpu.vector_store %arg6[%c0_66, %c0_67], %129 {strides = array<i32>} : memref<16x64xf32, #tpu.memory_space<vmem>>, vector<16x64xf32>,
    %133 = arith.truncf %131 : vector<16x64xf32> to vector<16x64xbf16>
    %c0_68 = arith.constant 0 : index
    %c0_69 = arith.constant 0 : index
    %134 = vector.load %arg5[%c0_68, %c0_69] : memref<16x64xbf16, #tpu.memory_space<vmem>>, vector<16x64xbf16>
    tpu.vector_store %arg5[%c0_68, %c0_69], %133 {strides = array<i32>} : memref<16x64xbf16, #tpu.memory_space<vmem>>, vector<16x64xbf16>,
    %135 = arith.index_cast %c3_i32 : i32 to index
    %c0_70 = arith.constant 0 : index
    %c0_71 = arith.constant 0 : index
    %136 = vector.load %arg4[%135, %c0_70, %c0_71] : memref<4x16x64xf32, #tpu.memory_space<vmem>>, vector<1x16x64xf32>
    %137 = vector.shape_cast %136 : vector<1x16x64xf32> to vector<16x64xf32>
    %138 = vector.shape_cast %131 : vector<16x64xf32> to vector<1x16x64xf32>
    tpu.vector_store %arg4[%135, %c0_70, %c0_71], %138 {strides = array<i32>} : memref<4x16x64xf32, #tpu.memory_space<vmem>>, vector<1x16x64xf32>,
    %c4_i32 = arith.constant 4 : i32
    return
  }
  func.func @transform_0(%arg0: i32, %arg1: i32) -> (i32, i32, i32) {
    %c0_i32 = arith.constant 0 : i32
    %c0_i32_0 = arith.constant 0 : i32
    return %arg1, %arg0, %c0_i32 : i32, i32, i32
  }
  func.func @transform_1(%arg0: i32, %arg1: i32) -> (i32, i32) {
    %c0_i32 = arith.constant 0 : i32
    %c0_i32_0 = arith.constant 0 : i32
    %c0_i32_1 = arith.constant 0 : i32
    return %c0_i32, %c0_i32_0 : i32, i32
  }
  func.func @transform_2(%arg0: i32, %arg1: i32) -> (i32, i32, i32) {
    %c0_i32 = arith.constant 0 : i32
    %c0_i32_0 = arith.constant 0 : i32
    return %arg1, %arg0, %c0_i32 : i32, i32, i32
  }
}

</mosaic_0001>

<bundles_post_ra>
// kernel: tpu_custom_call.1
= control target key start
LH: loop header
LB: loop body
LE: loop exit
PB: predicated region body
PF: predicated region fallthrough
CT: control target
= control target key end

     0   :  { %7 = vsyncpa [#allocation5], 0  ;;  %s1893_s0 = inlined_call_operand.hbm [shape: bf16[8,16,256], index: 0, kind: input, shape index: {}]   ;;  %s1894_s1 = inlined_call_operand.hbm [shape: bf16[64,256], index: 1, kind: input, shape index: {}]   ;;  %s1895_s2 = inlined_call_operand.hbm [shape: f32[8,16,64], index: 2, kind: output, shape index: {}]  }
   0x1   :  { %9 = vsyncpa [#allocation5 + $0x1], 0 }
   0x2   :  { %10 = vsyncpa [#allocation8], 0 }
   0x3   :  { %11 = vsyncpa [#allocation6], 0 }
   0x4   :  { %13 = vsyncpa [#allocation6 + $0x1], 0  ;;  %s1536_s9 = smov 0   ;;  %s1538_s10 = smov 0  }
   0x5   :  { %s1540_s11 = smov 0   ;;  %s1542_s12 = smov 0  }
   0x6   :  { %s1544_s13 = smov 0   ;;  %s1546_s14 = smov 0  }
   0x7 LB: > { %s1095_s15 = sadd.s32 4294967295, %s1508_s14   ;;  %s1096_s16 = sadd.s32 4294967294, %s1508_s14   ;;  %s1508_s14 = sphi %s1546_s14, %s19_s14   ;;  %s1504_s13 = sphi %s1544_s13, %s1919_s13   ;;  %s1500_s12 = sphi %s1542_s12, %s1918_s12   ;;  %s1496_s11 = sphi %s1540_s11, %s1917_s11   ;;  %s1492_s10 = sphi %s1538_s10, %s1916_s10   ;;  %s1488_s9 = sphi %s1536_s9, %s1915_s9  }
   0x8   : > { %p53_p0 = scmp.ne.s32.totalorder %s1492_s10, %s1488_s9  ;;  %p1570_p1 = scmp.eq.s32.totalorder %s1095_s15, 0 }
   0x9   : > { %p1574_p2 = scmp.eq.s32.totalorder %s1095_s15, 1  ;;  %p106_p3 = scmp.eq.s32.totalorder %s1096_s16, 1 }
   0xa   : > { %s1900_s17 = scalar_select %p1570_p1, 1, 0 }
   0xb   : > { %s1901_s18 = scalar_select %p1574_p2, 1, 0 }
   0xc   : > { %p1580_p4 = por %p1570_p1, %p53_p0  ;;  %p1097_p5 = scmp.ge.s32.totalorder %s1508_s14, 1 }
   0xd   : > { %p1585_p6 = por %p106_p3, %p53_p0  ;;  %p113_p7 = scmp.lt.s32.totalorder %s1508_s14, 3 }
   0xe   : > { %s1902_s19 = scalar_select %p1580_p4, 1, 0 }
   0xf   : > { %s1903_s20 = scalar_select %p1585_p6, 1, 0 }
  0x10   : > { %p1590_p8 = pnand %p1097_p5, %p113_p7  ;;  %s1510_s22 = smov [#allocation7]  }
  0x11   : > { %s125_s23 = sshll.u32 %s1510_s22, 4  ;;  %s28_s25 = sadd.s32 1, %s1504_s13  ;;  %s126_s23 = int_to_ptr.vmem [resolvable:$true] %s125_s23 }
  0x12   : > { %s1904_s21 = scalar_select %p1590_p8, 1, 0 }
  0x13   : > { %p1199_p9 = pneg %p1590_p8  ;;  %s1364_s28 = scalar_lea.hbm %s1894_s1, 1024 }
  0x14   : > { %p1365_p12 = scmp.ne.s32.totalorder %s1894_s1, %s1364_s28  ;;  %p1371_p5 = scmp.lt.u32.totalorder %s1364_s28, %s1894_s1 }
  0x15   : > { %p1599_p11 = pnand %p1199_p9, %p1570_p1 }
  0x17   : > { %p1366_p13 = pneg %p1599_p11 }
  0x19   : > { %p1367_p0 = pnand %p1366_p13, %p1365_p12 }
  0x1b   : > { %p1368_p3 = pneg %p1367_p0 }
  0x1d   : > { %p1373_p7 = pnand %p1371_p5, %p1368_p3 }
  0x1f   : > { %1376 = shalt.err (!%p1373_p7)
}
  0x20   : > { %s1377_s5 = scalar_lea.vmem %s126_s23, 1024  ;;  %p1385_p1 = scmp.lt.s32.totalorder %s126_s23, %s126_s23 }
  0x21   : > { %p1378_p9 = scmp.ne.s32.totalorder %s126_s23, %s1377_s5  ;;  %p1386_p4 = scmp.lt.s32.totalorder %s1377_s5, %s1377_s5 }
  0x23   : > { %p1380_p10 = pnand %p1378_p9, %p1366_p13  ;;  %p1387_p8 = por %p1386_p4, %p1385_p1 }
  0x25   : > { %p1381_p6 = pneg %p1380_p10 }
  0x27   : > { %p1388_p2 = pnand %p1387_p8, %p1381_p6 }
  0x29   : > { %1391 = shalt.err (!%p1388_p2)
}
  0x2a   : > { %s1511_s6 = smov 128   ;;  %s1512_s7 = smov 8  }
  0x2b   : > { %1202 = dma.hbm_to_vmem [thread:$0]  (!%p1599_p11), %s1894_s1, 1024, %s126_s23, [#allocation8], %s1511_s6, %s1511_s6, %s1512_s7  }
  0x2c   : > { %p29_p1 = scmp.ge.s32.totalorder %s28_s25, 2  ;;  %s40_s16 = sadd.s32 1, %s1496_s11 }
  0x2d   : > { %p47_p2 = scmp.ne.s32.totalorder %s1496_s11, %s1492_s10  ;;  %p48_p4 = scmp.eq.s32.totalorder %s1508_s14, 0 }
  0x2e   : > { %s1921_s25 = smov (%p29_p1, %s28_s25), 0  ;;  %p1907_p8 = scmp.ne.s32.totalorder %s1901_s18, 0 }
  0x2f   : > { %p1629_p6 = por %p48_p4, %p47_p2  ;;  %s35_s26 = ssub.s32 %s1504_s13, %s1921_s25 }
  0x30   : > { %p1635_p10 = por %p1907_p8, %p47_p2  ;;  %p1212_p12 = scmp.lt.s32.totalorder %s1508_s14, 2 }
  0x31   : > { %p38_p11 = scmp.eq.s32.totalorder %s35_s26, 0  ;;  %s139_s23 = sand.u32 1, %s1496_s11  }
  0x32   : > { %s1100_s27 = sshll.u32 %s139_s23, 6  ;;  %s1188_s29 = sshll.u32 %s1504_s13, 10 }
  0x33   : > { %s1644_s28 = scalar_select %p38_p11, %s1496_s11, %s40_s16  }
  0x34   : > { %s1650_s4 = scalar_lea.hbm %s1893_s0, %s1188_s29  ;;  %s143_s18 = scalar_lea.vmem [#allocation4], %s1100_s27 }
  0x35   : > { %s154_s5 = sshll.u32 %s143_s18, 4  ;;  %p1656_p13 = pnand %p1212_p12, %p1629_p6  ;;  %s1652_s5 = int_to_ptr.vmem [resolvable:$true] %s154_s5 }
  0x36   : > { %s1660_s15 = scalar_lea.sflag [#allocation5], %s139_s23  ;;  %s1392_s16 = scalar_lea.hbm %s1650_s4, 1024 }
  0x37   : > { %p1393_p0 = scmp.ne.s32.totalorder %s1650_s4, %s1392_s16  ;;  %p1394_p3 = pneg %p1656_p13 }
  0x38   : > { %s1397_s22 = scalar_lea.hbm %s1893_s0, 2048  ;;  %p1398_p9 = scmp.lt.u32.totalorder %s1650_s4, %s1893_s0 }
  0x39   : > { %p1395_p5 = pnand %p1394_p3, %p1393_p0  ;;  %p1399_p1 = scmp.lt.u32.totalorder %s1397_s22, %s1392_s16 }
  0x3a   : > { %p1401_p4 = scmp.lt.u32.totalorder %s1392_s16, %s1650_s4 }
  0x3b   : > { %p1396_p7 = pneg %p1395_p5  ;;  %p1400_p2 = por %p1399_p1, %p1398_p9 }
  0x3d   : > { %p1402_p6 = por %p1401_p4, %p1400_p2 }
  0x3f   : > { %p1403_p8 = pnand %p1402_p6, %p1396_p7 }
  0x41   : > { %1406 = shalt.err (!%p1403_p8)
}
  0x42   : > { %s1407_s23 = scalar_lea.vmem %s1652_s5, 1024  ;;  %s1513_s3 = smov [#allocation4]  }
  0x43   : > { %p1408_p12 = scmp.ne.s32.totalorder %s1652_s5, %s1407_s23  ;;  %s1412_s18 = sshll.u32 %s1513_s3, 4  ;;  %s1413_s18 = int_to_ptr.vmem [resolvable:$false] %s1412_s18 }
  0x44   : > { %s1414_s26 = scalar_lea.vmem %s1413_s18, 2048  ;;  %p1415_p5 = scmp.lt.s32.totalorder %s1652_s5, %s1413_s18 }
  0x45   : > { %p1410_p11 = pnand %p1408_p12, %p1394_p3  ;;  %p1416_p9 = scmp.lt.s32.totalorder %s1414_s26, %s1407_s23 }
  0x47   : > { %p1411_p0 = pneg %p1410_p11  ;;  %p1417_p1 = por %p1416_p9, %p1415_p5 }
  0x49   : > { %p1418_p2 = pnand %p1417_p1, %p1411_p0 }
  0x4b   : > { %1421 = shalt.err (!%p1418_p2)
}
  0x4c   : > { %1206 = dma.hbm_to_vmem [thread:$0]  (!%p1656_p13), %s1650_s4, 1024, %s1652_s5, %s1660_s15, %s1511_s6, %s1511_s6, %s1512_s7  }
  0x4d   : > { %p1910_p3 = scmp.ne.s32.totalorder %s1904_s21, 0 }
  0x4e   : > { %s1694_s16 = sand.u32 (!%p1910_p3), 1, %s1492_s10   ;;  %p1911_p7 = scmp.ne.s32.totalorder (!%p1910_p3), %s1902_s19, 0 }
  0x4f   : > { %166 = sbr.rel (%p1910_p3) target bundleno = 2601 (0xa29), region = 28  ;;  %s1105_s27 = sshll.u32 (!%p1910_p3), %s1694_s16, 6 }
  0x50   : > { %s169_s22 = scalar_lea.sflag (!%p1910_p3), [#allocation5], %s1694_s16  ;;  %s1698_s29 = scalar_lea.vmem (!%p1910_p3), [#allocation4], %s1105_s27 }
  0x56   : > { %1475 = dma.done.wait (%p1911_p7), %s169_s22, 1024  }
  0x57   : > { %1477 = vsyncadd (%p1911_p7), %s169_s22, 4294966272  ;;  %p1912_p13 = scmp.ne.s32.totalorder %s1900_s17, 0 }
  0x59   : > { %1479 = dma.done.wait (%p1912_p13), [#allocation8], 1024  }
  0x5a   : > { %1481 = vsyncadd (%p1912_p13), [#allocation8], 4294966272  ;;  %s1708_s21 = scalar_lea.vmem [#allocation9], %s1105_s27  ;;  %p1108_p4 = scmp.ne.s32.totalorder %s1500_s12, 0 }
  0x5b   : > { %vm206_vm0 = vcmask (!%p1108_p4), 523264   ;;  %v1514_v0 = vmov (!%p1108_p4), 0   ;;  %v1515_v1 = vmov (!%p1108_p4), 0.0  }
  0x5c   : > { %205 = sbr.rel (%p1108_p4) target bundleno = 99 (0x63), region = 40  ;;  %207 = vst.msk [vmem:[#allocation2] sm:$0xff] (!%p1108_p4), %vm206_vm0, %v1514_v0  ;;  %208 = vst.msk [vmem:[#allocation3] sm:$0xff] (!%p1108_p4), %vm206_vm0, %v1515_v1 }
  0x5d   : > { %209 = vst.msk [vmem:[#allocation3 + $0x8] sm:$0xff] (!%p1108_p4), %vm206_vm0, %v1515_v1 }
  0x63 PF: > { %v1272_v2 = vld [vmem:[#allocation7 + $0x4] ss:$8 sps:$4 sm:$0xff]   ;;  %v1711_v3 = vld [vmem:[#allocation7] ss:$8 sps:$4 sm:$0xff]   ;;  %v1516_v4 = vmov 0   ;;  %v344_v8 = vld [vmem:[#allocation3] sm:$0xff] }
  0x64   : > { %301 = vmatprep.mubr.bf16.mxu0 %v1516_v4  ;;  %493 = vmatprep.mubr.bf16.mxu1 %v1516_v4  ;;  %v1715_v5 = vld [vmem:[#allocation7 + $0x14] ss:$8 sps:$4 sm:$0xff]   ;;  %v1718_v6 = vld [vmem:[#allocation7 + $0x10] ss:$8 sps:$4 sm:$0xff]   ;;  %v1722_v7 = vld [vmem:[#allocation7 + $0x24] ss:$8 sps:$4 sm:$0xff]  }
  0x65   : > { %269 = vmatprep.subr.bf16.mxu0 %v1272_v2  ;;  %461 = vmatprep.subr.bf16.mxu1 %v1272_v2  ;;  %s1517_s17 = smov 64   ;;  %v1727_v9 = vld [vmem:[#allocation7 + $0x20] ss:$8 sps:$4 sm:$0xff]   ;;  %v345_v10 = vld [vmem:[#allocation3 + $0x8] sm:$0xff]  ;;  %vm265_vm1 = vcmask 523264   ;;  %s1190_s19 = sshll.u32 %s1500_s12, 10 }
  0x66   : > { %270 = vmatpush1.bf16.msra.mxu0 %v1711_v3  ;;  %462 = vmatpush1.bf16.msra.mxu1 %v1711_v3  ;;  %v1731_v11 = vld [vmem:[#allocation7 + $0x34] ss:$8 sps:$4 sm:$0xff]   ;;  %v1736_v12 = vld [vmem:[#allocation7 + $0x30] ss:$8 sps:$4 sm:$0xff]   ;;  %v216_v13 = vld [vmem:[#allocation2] sm:$0xff]  ;;  %s998_s6 = sshll.u32 %s1708_s21, 4  ;;  %s1835_s5 = scalar_lea.hbm %s1895_s2, %s1190_s19  ;;  %s1837_s6 = int_to_ptr.vmem [resolvable:$true] %s998_s6 }
  0x67   : > { %271 = vmatprep.subr.bf16.mxu0 %v1715_v5  ;;  %463 = vmatprep.subr.bf16.mxu1 %v1715_v5  ;;  %v210_v14 = vld [vmem:[%s1698_s29] sm:$0xff]  ;;  %v211_v15 = vld [vmem:[%s1698_s29 + $0x8] sm:$0xff]  ;;  %s982_s12 = scalar_lea.sflag [#allocation6], %s1694_s16  ;;  %s1422_s8 = scalar_lea.vmem %s1837_s6, 1024 }
  0x68   : > { %348 = vrot.lane.b32.xlu1 %v344_v8, %s1517_s17  ;;  %v213_v16 = vunpack.c.h.bf16 %v210_v14  ;;  %v214_v17 = vunpack.c.l.bf16 %v211_v15  ;;  %v215_v19 = vunpack.c.h.bf16 %v211_v15  ;;  %v212_v38 = vunpack.c.l.bf16 %v210_v14  ;;  %v1124_v14 = vld [vmem:[%s1698_s29 + $0x10] sm:$0xff]  ;;  %v1125_v15 = vld [vmem:[%s1698_s29 + $0x18] sm:$0xff]  ;;  %p1423_p6 = scmp.ne.s32.totalorder %s1837_s6, %s1422_s8  ;;  %s1518_s15 = smov [#allocation9]  }
  0x69   : > { %s1426_s30 = sshll.u32 %s1518_s15, 4  ;;  %s1427_s30 = int_to_ptr.vmem [resolvable:$false] %s1426_s30 }
  0x6a   : > { %272 = vmatpush1.bf16.msra.mxu0 %v1718_v6  ;;  %464 = vmatpush1.bf16.msra.mxu1 %v1718_v6  ;;  %p1424_p8 = pnand %p1423_p6, %p1635_p10  ;;  %s1428_s23 = scalar_lea.vmem %s1427_s30, 2048 }
  0x6b   : > { %273 = vmatprep.subr.bf16.mxu0 %v1722_v7  ;;  %465 = vmatprep.subr.bf16.mxu1 %v1722_v7  ;;  %p1429_p11 = scmp.lt.s32.totalorder %s1837_s6, %s1427_s30  ;;  %p1430_p0 = scmp.lt.s32.totalorder %s1428_s23, %s1422_s8 }
  0x6c   : > { %350 = vrot.lane.b32.xlu1 %v345_v10, %s1517_s17  ;;  %p1425_p12 = pneg %p1424_p8 }
  0x6d   : > { %p1431_p5 = por %p1430_p0, %p1429_p11 }
  0x6e   : > { %274 = vmatpush1.bf16.msra.mxu0 %v1727_v9  ;;  %466 = vmatpush1.bf16.msra.mxu1 %v1727_v9 }
  0x6f   : > { %275 = vmatprep.subr.bf16.mxu0 %v1731_v11  ;;  %467 = vmatprep.subr.bf16.mxu1 %v1731_v11  ;;  %p1432_p9 = pnand %p1431_p5, %p1425_p12 }
  0x72   : > { %276 = vmatpush1.bf16.msra.mxu0 %v1736_v12  ;;  %468 = vmatpush1.bf16.msra.mxu1 %v1736_v12 }
  0x73   : > { %654 = vmatprep.subr.bf16.mxu0 %v1272_v2  ;;  %847 = vmatprep.subr.bf16.mxu1 %v1272_v2 }
  0x75   : > { %1117 = vmatmul.mubr.msk.bf16.vlgmr.msra.gmra.mrb[0].mxu0 %vm265_vm1, %v216_v13 }
  0x76   : > { %655 = vmatpush1.bf16.msra.mxu0 %v1711_v3  ;;  %686 = vmatprep.mubr.bf16.mxu0 %v1516_v4 }
  0x77   : > { %656 = vmatprep.subr.bf16.mxu0 %v1715_v5 }
  0x7a   : > { %657 = vmatpush1.bf16.msra.mxu0 %v1718_v6 }
  0x7b   : > { %658 = vmatprep.subr.bf16.mxu0 %v1722_v7 }
  0x7e   : > { %659 = vmatpush1.bf16.msra.mxu0 %v1727_v9 }
  0x7f   : > { %660 = vmatprep.subr.bf16.mxu0 %v1731_v11 }
  0x82   : > { %661 = vmatpush1.bf16.msra.mxu0 %v1736_v12 }
  0xda   : > { %v349_v52 = vpop.permute.xlu1 %348 }
  0xde   : > { %v351_v54 = vpop.permute.xlu1 %350 }
 0x148   : > { %v303_v18 = vpop.f32.mrb[0].mxu0 }
 0x149   : > { %v305_v20 = vpop.f32.mrb[1].mxu0  ;;  %v312_v39 = vadd.f32 %v303_v18, %v212_v38 }
 0x14a   : > { %v313_v21 = vadd.f32 %v305_v20, %v213_v16  ;;  %v307_v22 = vpop.f32.mrb[2].mxu0  ;;  %v406_v16 = vunpack.c.h.bf16 %v1124_v14 }
 0x14b   : > { %v314_v23 = vadd.f32 %v307_v22, %v214_v17  ;;  %v309_v24 = vpop.f32.mrb[3].mxu0  ;;  %v1118_v40 = vmul.f32 -1.442695, %v312_v39  ;;  %v407_v17 = vunpack.c.l.bf16 %v1125_v15 }
 0x14c   : > { %v1119_v25 = vmul.f32 -1.442695, %v313_v21  ;;  %v315_v26 = vadd.f32 %v309_v24, %v215_v19 }
 0x14d   : > { %v1120_v41 = vmul.f32 -1.442695, %v314_v23 }
 0x14e   : > { %1284 = vpow2.f32 %v1119_v25  ;;  %v1121_v27 = vmul.f32 -1.442695, %v315_v26 }
 0x150   : > { %1286 = vpow2.f32 %v1121_v27 }
 0x158   : > { %v1285_v28 = vpop.eup %1284 }
 0x159   : > { %v329_v29 = vadd.f32 1.0, %v1285_v28 }
 0x15a   : > { %v1287_v30 = vpop.eup %1286 }
 0x15b   : > { %1288 = vrcp.f32 %v329_v29  ;;  %v331_v31 = vadd.f32 1.0, %v1287_v30 }
 0x15d   : > { %1290 = vrcp.f32 %v331_v31 }
 0x15e   : > { %1292 = vpow2.f32 %v1118_v40 }
 0x15f   : > { %1294 = vpow2.f32 %v1120_v41 }
 0x165   : > { %v1289_v32 = vpop.eup %1288 }
 0x166   : > { %v340_v33 = vmul.f32 2.0, %v1289_v32 }
 0x167   : > { %v1291_v34 = vpop.eup %1290 }
 0x168   : > { %v1122_v35 = vadd.f32 -1.0, %v340_v33  ;;  %v341_v36 = vmul.f32 2.0, %v1291_v34  ;;  %v1293_v42 = vpop.eup %1292 }
 0x169   : > { %v328_v43 = vadd.f32 1.0, %v1293_v42  ;;  %v1295_v44 = vpop.eup %1294 }
 0x16a   : > { %358 = vrot.lane.b32.xlu0 %v1122_v35, %s1517_s17  ;;  %v1123_v37 = vadd.f32 -1.0, %v341_v36  ;;  %v330_v45 = vadd.f32 1.0, %v1295_v44 }
 0x16b   : > { %1296 = vrcp.f32 %v328_v43 }
 0x16c   : > { %1298 = vrcp.f32 %v330_v45 }
 0x16e   : > { %360 = vrot.lane.b32.xlu0 %v1123_v37, %s1517_s17 }
 0x175   : > { %v1297_v46 = vpop.eup %1296 }
 0x176   : > { %v1299_v49 = vpop.eup %1298  ;;  %v354_v53 = vmul.f32 %v1297_v46, %v349_v52 }
 0x177   : > { %v355_v57 = vmul.f32 %v1299_v49, %v351_v54 }
 0x1dc   : > { %v359_v47 = vpop.permute.xlu0 %358 }
 0x1dd   : > { %v364_v48 = vmul.f32 %v1297_v46, %v359_v47 }
 0x1df   : > { %368 = vrot.lane.b32.xlu0 %v364_v48, %s1517_s17 }
 0x1e0   : > { %v361_v50 = vpop.permute.xlu0 %360 }
 0x1e1   : > { %v365_v51 = vmul.f32 %v1299_v49, %v361_v50 }
 0x1e3   : > { %370 = vrot.lane.b32.xlu1 %v365_v51, %s1517_s17 }
 0x251   : > { %v369_v55 = vpop.permute.xlu0 %368 }
 0x252   : > { %v374_v56 = vadd.f32 %v369_v55, %v354_v53 }
 0x254   : > { %1300 = vtanh.f32 %v374_v56 }
 0x255   : > { %v371_v58 = vpop.permute.xlu1 %370 }
 0x256   : > { %v375_v59 = vadd.f32 %v371_v58, %v355_v57 }
 0x258   : > { %1302 = vtanh.f32 %v375_v59 }
 0x25e   : > { %v1301_v60 = vpop.eup %1300 }
 0x25f   : > { %380 = vrot.lane.b32.xlu0 %v1301_v60, %s1517_s17 }
 0x262   : > { %v1303_v61 = vpop.eup %1302 }
 0x263   : > { %382 = vrot.lane.b32.xlu1 %v1303_v61, %s1517_s17  ;;  %390 = vrot.lane.b32.xlu0 %v374_v56, %s1517_s17 }
 0x267   : > { %392 = vrot.lane.b32.xlu1 %v375_v59, %s1517_s17 }
 0x2d1   : > { %v381_v62 = vpop.permute.xlu0 %380 }
 0x2d2   : > { %v386_v63 = vmul.f32 %v1289_v32, %v381_v62  ;;  %v405_v32 = vunpack.c.l.bf16 %v1124_v14 }
 0x2d4   : > { %400 = vst.msk [vmem:[%s1708_s21] sm:$0xff] %vm265_vm1, %v386_v63 }
 0x2d5   : > { %v383_v0 = vpop.permute.xlu1 %382  ;;  %v391_v1 = vpop.permute.xlu0 %390 }
 0x2d6   : > { %v387_v2 = vmul.f32 %v1291_v34, %v383_v0  ;;  %396 = vst.msk [vmem:[#allocation3] sm:$0xff] %vm265_vm1, %v391_v1  ;;  %v1143_v0 = vld [vmem:[%s1698_s29 + $0x20] sm:$0xff]  ;;  %v1144_v1 = vld [vmem:[%s1698_s29 + $0x28] sm:$0xff] }
 0x2d8   : > { %v398_v8 = vpack.c.bf16 %v387_v2, %v386_v63  ;;  %401 = vst.msk [vmem:[%s1708_s21 + $0x8] sm:$0xff] %vm265_vm1, %v387_v2  ;;  %v599_v2 = vunpack.c.h.bf16 %v1143_v0 }
 0x2d9   : > { %v393_v10 = vpop.permute.xlu1 %392 }
 0x2da   : > { %399 = vst.msk [vmem:[#allocation2] sm:$0xff] %vm265_vm1, %v398_v8  ;;  %397 = vst.msk [vmem:[#allocation3 + $0x8] sm:$0xff] %vm265_vm1, %v393_v10  ;;  %v600_v8 = vunpack.c.l.bf16 %v1144_v1 }
 0x2dd   : > { %v536_v30 = vld [vmem:[#allocation3] sm:$0xff] }
 0x2e1   : > { %v409_v13 = vld [vmem:[#allocation2] sm:$0xff]  ;;  %v537_v31 = vld [vmem:[#allocation3 + $0x8] sm:$0xff] }
 0x2e2   : > { %1134 = vmatmul.mubr.msk.bf16.vlgmr.msra.gmra.mrb[0].mxu1 %vm265_vm1, %v409_v13  ;;  %v601_v13 = vunpack.c.h.bf16 %v1144_v1 }
 0x2e3   : > { %848 = vmatpush1.bf16.msra.mxu1 %v1711_v3  ;;  %879 = vmatprep.mubr.bf16.mxu1 %v1516_v4  ;;  %v408_v3 = vunpack.c.h.bf16 %v1125_v15 }
 0x2e4   : > { %849 = vmatprep.subr.bf16.mxu1 %v1715_v5 }
 0x2e7   : > { %850 = vmatpush1.bf16.msra.mxu1 %v1718_v6 }
 0x2e8   : > { %851 = vmatprep.subr.bf16.mxu1 %v1722_v7 }
 0x2eb   : > { %852 = vmatpush1.bf16.msra.mxu1 %v1727_v9 }
 0x2ec   : > { %853 = vmatprep.subr.bf16.mxu1 %v1731_v11 }
 0x2ef   : > { %854 = vmatpush1.bf16.msra.mxu1 %v1736_v12 }
 0x3b5   : > { %v495_v18 = vpop.f32.mrb[0].mxu1 }
 0x3b6   : > { %v497_v19 = vpop.f32.mrb[1].mxu1  ;;  %v504_v33 = vadd.f32 %v495_v18, %v405_v32 }
 0x3b7   : > { %v505_v4 = vadd.f32 %v497_v19, %v406_v16  ;;  %v499_v20 = vpop.f32.mrb[2].mxu1 }
 0x3b8   : > { %v506_v5 = vadd.f32 %v499_v20, %v407_v17  ;;  %v501_v21 = vpop.f32.mrb[3].mxu1  ;;  %v1135_v34 = vmul.f32 -1.442695, %v504_v33 }
 0x3b9   : > { %v1136_v6 = vmul.f32 -1.442695, %v505_v4  ;;  %v507_v22 = vadd.f32 %v501_v21, %v408_v3 }
 0x3ba   : > { %v1137_v35 = vmul.f32 -1.442695, %v506_v5 }
 0x3bb   : > { %1304 = vpow2.f32 %v1136_v6  ;;  %v1138_v7 = vmul.f32 -1.442695, %v507_v22 }
 0x3bd   : > { %1306 = vpow2.f32 %v1138_v7 }
 0x3c5   : > { %v1305_v9 = vpop.eup %1304 }
 0x3c6   : > { %v521_v11 = vadd.f32 1.0, %v1305_v9 }
 0x3c7   : > { %v1307_v23 = vpop.eup %1306 }
 0x3c8   : > { %1308 = vrcp.f32 %v521_v11  ;;  %v523_v12 = vadd.f32 1.0, %v1307_v23 }
 0x3ca   : > { %1310 = vrcp.f32 %v523_v12 }
 0x3cb   : > { %1312 = vpow2.f32 %v1135_v34 }
 0x3cc   : > { %1314 = vpow2.f32 %v1137_v35 }
 0x3d2   : > { %v1309_v24 = vpop.eup %1308 }
 0x3d3   : > { %v532_v25 = vmul.f32 2.0, %v1309_v24 }
 0x3d4   : > { %v1311_v26 = vpop.eup %1310 }
 0x3d5   : > { %v1139_v27 = vadd.f32 -1.0, %v532_v25  ;;  %v533_v28 = vmul.f32 2.0, %v1311_v26  ;;  %v1313_v36 = vpop.eup %1312 }
 0x3d6   : > { %v1315_v37 = vpop.eup %1314  ;;  %v520_v38 = vadd.f32 1.0, %v1313_v36 }
 0x3d7   : > { %550 = vrot.lane.b32.xlu0 %v1139_v27, %s1517_s17  ;;  %v1140_v29 = vadd.f32 -1.0, %v533_v28  ;;  %v522_v39 = vadd.f32 1.0, %v1315_v37 }
 0x3d8   : > { %1316 = vrcp.f32 %v520_v38 }
 0x3d9   : > { %552 = vrot.lane.b32.xlu1 %v1140_v29, %s1517_s17  ;;  %1318 = vrcp.f32 %v522_v39 }
 0x3db   : > { %540 = vrot.lane.b32.xlu0 %v536_v30, %s1517_s17 }
 0x3dd   : > { %542 = vrot.lane.b32.xlu1 %v537_v31, %s1517_s17 }
 0x3e2   : > { %v1317_v40 = vpop.eup %1316 }
 0x3e3   : > { %v1319_v43 = vpop.eup %1318 }
 0x449   : > { %v551_v41 = vpop.permute.xlu0 %550 }
 0x44a   : > { %v556_v42 = vmul.f32 %v1317_v40, %v551_v41 }
 0x44b   : > { %v553_v44 = vpop.permute.xlu1 %552 }
 0x44c   : > { %v557_v45 = vmul.f32 %v1319_v43, %v553_v44  ;;  %560 = vrot.lane.b32.xlu0 %v556_v42, %s1517_s17 }
 0x44d   : > { %v541_v46 = vpop.permute.xlu0 %540 }
 0x44e   : > { %562 = vrot.lane.b32.xlu1 %v557_v45, %s1517_s17  ;;  %v546_v48 = vmul.f32 %v1317_v40, %v541_v46 }
 0x44f   : > { %v543_v47 = vpop.permute.xlu1 %542 }
 0x450   : > { %v547_v50 = vmul.f32 %v1319_v43, %v543_v47 }
 0x4be   : > { %v561_v49 = vpop.permute.xlu0 %560 }
 0x4bf   : > { %v566_v51 = vadd.f32 %v561_v49, %v546_v48 }
 0x4c0   : > { %v563_v52 = vpop.permute.xlu1 %562 }
 0x4c1   : > { %1320 = vtanh.f32 %v566_v51  ;;  %v567_v53 = vadd.f32 %v563_v52, %v547_v50 }
 0x4c3   : > { %1322 = vtanh.f32 %v567_v53 }
 0x4cb   : > { %v1321_v54 = vpop.eup %1320 }
 0x4cc   : > { %572 = vrot.lane.b32.xlu0 %v1321_v54, %s1517_s17 }
 0x4cd   : > { %v1323_v55 = vpop.eup %1322 }
 0x4ce   : > { %574 = vrot.lane.b32.xlu1 %v1323_v55, %s1517_s17 }
 0x4d0   : > { %582 = vrot.lane.b32.xlu0 %v566_v51, %s1517_s17 }
 0x4d2   : > { %584 = vrot.lane.b32.xlu1 %v567_v53, %s1517_s17 }
 0x53e   : > { %v573_v56 = vpop.permute.xlu0 %572 }
 0x53f   : > { %v578_v57 = vmul.f32 %v1309_v24, %v573_v56 }
 0x540   : > { %v575_v58 = vpop.permute.xlu1 %574 }
 0x541   : > { %1141 = vst.msk [vmem:[%s1708_s21 + $0x10] sm:$0xff] %vm265_vm1, %v578_v57  ;;  %v579_v59 = vmul.f32 %v1311_v26, %v575_v58  ;;  %v598_v26 = vunpack.c.l.bf16 %v1143_v0  ;;  %v1162_v58 = vld [vmem:[%s1698_s29 + $0x30] sm:$0xff] }
 0x542   : > { %v583_v60 = vpop.permute.xlu0 %582 }
 0x543   : > { %v590_v61 = vpack.c.bf16 %v579_v59, %v578_v57  ;;  %1142 = vst.msk [vmem:[%s1708_s21 + $0x18] sm:$0xff] %vm265_vm1, %v579_v59  ;;  %588 = vst.msk [vmem:[#allocation3] sm:$0xff] %vm265_vm1, %v583_v60  ;;  %v1163_v59 = vld [vmem:[%s1698_s29 + $0x38] sm:$0xff]  ;;  %v792_v60 = vunpack.c.h.bf16 %v1162_v58 }
 0x544   : > { %v585_v62 = vpop.permute.xlu1 %584 }
 0x545   : > { %591 = vst.msk [vmem:[#allocation2] sm:$0xff] %vm265_vm1, %v590_v61  ;;  %589 = vst.msk [vmem:[#allocation3 + $0x8] sm:$0xff] %vm265_vm1, %v585_v62  ;;  %v793_v61 = vunpack.c.l.bf16 %v1163_v59 }
 0x54a   : > { %v729_v24 = vld [vmem:[#allocation3] sm:$0xff] }
 0x54c   : > { %v602_v63 = vld [vmem:[#allocation2] sm:$0xff]  ;;  %v730_v25 = vld [vmem:[#allocation3 + $0x8] sm:$0xff] }
 0x54d   : > { %1153 = vmatmul.mubr.msk.bf16.vlgmr.msra.gmra.mrb[4].mxu0 %vm265_vm1, %v602_v63  ;;  %v794_v63 = vunpack.c.h.bf16 %v1163_v59 }
 0x620   : > { %v688_v10 = vpop.f32.mrb[4].mxu0 }
 0x621   : > { %v690_v14 = vpop.f32.mrb[5].mxu0  ;;  %v697_v27 = vadd.f32 %v688_v10, %v598_v26 }
 0x622   : > { %v698_v15 = vadd.f32 %v690_v14, %v599_v2  ;;  %v692_v16 = vpop.f32.mrb[6].mxu0 }
 0x623   : > { %v699_v17 = vadd.f32 %v692_v16, %v600_v8  ;;  %v694_v18 = vpop.f32.mrb[7].mxu0  ;;  %v1154_v28 = vmul.f32 -1.442695, %v697_v27 }
 0x624   : > { %v1155_v3 = vmul.f32 -1.442695, %v698_v15  ;;  %v700_v19 = vadd.f32 %v694_v18, %v601_v13 }
 0x625   : > { %v1156_v29 = vmul.f32 -1.442695, %v699_v17 }
 0x626   : > { %1324 = vpow2.f32 %v1155_v3  ;;  %v1157_v4 = vmul.f32 -1.442695, %v700_v19 }
 0x628   : > { %1326 = vpow2.f32 %v1157_v4 }
 0x630   : > { %v1325_v20 = vpop.eup %1324 }
 0x631   : > { %v714_v5 = vadd.f32 1.0, %v1325_v20 }
 0x632   : > { %v1327_v21 = vpop.eup %1326 }
 0x633   : > { %1328 = vrcp.f32 %v714_v5  ;;  %v716_v6 = vadd.f32 1.0, %v1327_v21 }
 0x635   : > { %1330 = vrcp.f32 %v716_v6 }
 0x636   : > { %1332 = vpow2.f32 %v1154_v28 }
 0x637   : > { %1334 = vpow2.f32 %v1156_v29 }
 0x63d   : > { %v1329_v22 = vpop.eup %1328 }
 0x63e   : > { %v725_v7 = vmul.f32 2.0, %v1329_v22 }
 0x63f   : > { %v1331_v9 = vpop.eup %1330 }
 0x640   : > { %v1158_v11 = vadd.f32 -1.0, %v725_v7  ;;  %v726_v23 = vmul.f32 2.0, %v1331_v9  ;;  %v1333_v30 = vpop.eup %1332 }
 0x641   : > { %v1335_v31 = vpop.eup %1334  ;;  %v713_v32 = vadd.f32 1.0, %v1333_v30 }
 0x642   : > { %743 = vrot.lane.b32.xlu0 %v1158_v11, %s1517_s17  ;;  %v1159_v12 = vadd.f32 -1.0, %v726_v23  ;;  %v715_v33 = vadd.f32 1.0, %v1335_v31 }
 0x643   : > { %1336 = vrcp.f32 %v713_v32 }
 0x644   : > { %745 = vrot.lane.b32.xlu1 %v1159_v12, %s1517_s17  ;;  %1338 = vrcp.f32 %v715_v33 }
 0x646   : > { %733 = vrot.lane.b32.xlu0 %v729_v24, %s1517_s17 }
 0x648   : > { %735 = vrot.lane.b32.xlu1 %v730_v25, %s1517_s17 }
 0x64d   : > { %v1337_v34 = vpop.eup %1336 }
 0x64e   : > { %v1339_v37 = vpop.eup %1338 }
 0x6b4   : > { %v744_v35 = vpop.permute.xlu0 %743 }
 0x6b5   : > { %v749_v36 = vmul.f32 %v1337_v34, %v744_v35 }
 0x6b6   : > { %v746_v38 = vpop.permute.xlu1 %745 }
 0x6b7   : > { %v750_v39 = vmul.f32 %v1339_v37, %v746_v38  ;;  %753 = vrot.lane.b32.xlu0 %v749_v36, %s1517_s17 }
 0x6b8   : > { %v734_v40 = vpop.permute.xlu0 %733 }
 0x6b9   : > { %755 = vrot.lane.b32.xlu1 %v750_v39, %s1517_s17  ;;  %v739_v42 = vmul.f32 %v1337_v34, %v734_v40 }
 0x6ba   : > { %v736_v41 = vpop.permute.xlu1 %735 }
 0x6bb   : > { %v740_v44 = vmul.f32 %v1339_v37, %v736_v41 }
 0x729   : > { %v754_v43 = vpop.permute.xlu0 %753 }
 0x72a   : > { %v759_v45 = vadd.f32 %v754_v43, %v739_v42 }
 0x72b   : > { %v756_v46 = vpop.permute.xlu1 %755 }
 0x72c   : > { %1340 = vtanh.f32 %v759_v45  ;;  %v760_v47 = vadd.f32 %v756_v46, %v740_v44 }
 0x72e   : > { %1342 = vtanh.f32 %v760_v47 }
 0x736   : > { %v1341_v48 = vpop.eup %1340 }
 0x737   : > { %765 = vrot.lane.b32.xlu0 %v1341_v48, %s1517_s17 }
 0x738   : > { %v1343_v49 = vpop.eup %1342 }
 0x739   : > { %767 = vrot.lane.b32.xlu1 %v1343_v49, %s1517_s17 }
 0x73b   : > { %775 = vrot.lane.b32.xlu0 %v759_v45, %s1517_s17 }
 0x73d   : > { %777 = vrot.lane.b32.xlu1 %v760_v47, %s1517_s17 }
 0x7a9   : > { %v766_v50 = vpop.permute.xlu0 %765 }
 0x7aa   : > { %v771_v51 = vmul.f32 %v1329_v22, %v766_v50 }
 0x7ab   : > { %v768_v52 = vpop.permute.xlu1 %767 }
 0x7ac   : > { %1160 = vst.msk [vmem:[%s1708_s21 + $0x20] sm:$0xff] %vm265_vm1, %v771_v51  ;;  %v772_v53 = vmul.f32 %v1331_v9, %v768_v52  ;;  %v791_v9 = vunpack.c.l.bf16 %v1162_v58 }
 0x7ad   : > { %v776_v54 = vpop.permute.xlu0 %775 }
 0x7ae   : > { %v783_v55 = vpack.c.bf16 %v772_v53, %v771_v51  ;;  %1161 = vst.msk [vmem:[%s1708_s21 + $0x28] sm:$0xff] %vm265_vm1, %v772_v53  ;;  %781 = vst.msk [vmem:[#allocation3] sm:$0xff] %vm265_vm1, %v776_v54 }
 0x7af   : > { %v778_v56 = vpop.permute.xlu1 %777 }
 0x7b0   : > { %784 = vst.msk [vmem:[#allocation2] sm:$0xff] %vm265_vm1, %v783_v55  ;;  %782 = vst.msk [vmem:[#allocation3 + $0x8] sm:$0xff] %vm265_vm1, %v778_v56 }
 0x7b5   : > { %v922_v22 = vld [vmem:[#allocation3] sm:$0xff] }
 0x7b7   : > { %v795_v57 = vld [vmem:[#allocation2] sm:$0xff]  ;;  %v923_v7 = vld [vmem:[#allocation3 + $0x8] sm:$0xff] }
 0x7b8   : > { %1172 = vmatmul.mubr.msk.bf16.vlgmr.msra.gmra.mrb[4].mxu1 %vm265_vm1, %v795_v57 }
 0x88b   : > { %v881_v62 = vpop.f32.mrb[4].mxu1 }
 0x88c   : > { %v883_v0 = vpop.f32.mrb[5].mxu1  ;;  %v890_v11 = vadd.f32 %v881_v62, %v791_v9 }
 0x88d   : > { %v891_v1 = vadd.f32 %v883_v0, %v792_v60  ;;  %v885_v2 = vpop.f32.mrb[6].mxu1 }
 0x88e   : > { %v892_v8 = vadd.f32 %v885_v2, %v793_v61  ;;  %v887_v10 = vpop.f32.mrb[7].mxu1  ;;  %v1173_v23 = vmul.f32 -1.442695, %v890_v11 }
 0x88f   : > { %v1174_v13 = vmul.f32 -1.442695, %v891_v1  ;;  %v893_v14 = vadd.f32 %v887_v10, %v794_v63 }
 0x890   : > { %v1175_v12 = vmul.f32 -1.442695, %v892_v8 }
 0x891   : > { %1344 = vpow2.f32 %v1174_v13  ;;  %v1176_v15 = vmul.f32 -1.442695, %v893_v14 }
 0x893   : > { %1346 = vpow2.f32 %v1176_v15 }
 0x89b   : > { %v1345_v16 = vpop.eup %1344 }
 0x89c   : > { %v907_v17 = vadd.f32 1.0, %v1345_v16 }
 0x89d   : > { %v1347_v18 = vpop.eup %1346 }
 0x89e   : > { %1348 = vrcp.f32 %v907_v17  ;;  %v909_v3 = vadd.f32 1.0, %v1347_v18 }
 0x8a0   : > { %1350 = vrcp.f32 %v909_v3 }
 0x8a1   : > { %1352 = vpow2.f32 %v1173_v23 }
 0x8a2   : > { %1354 = vpow2.f32 %v1175_v12 }
 0x8a8   : > { %v1349_v19 = vpop.eup %1348 }
 0x8a9   : > { %v918_v4 = vmul.f32 2.0, %v1349_v19 }
 0x8aa   : > { %v1351_v20 = vpop.eup %1350 }
 0x8ab   : > { %v1177_v5 = vadd.f32 -1.0, %v918_v4  ;;  %v919_v21 = vmul.f32 2.0, %v1351_v20  ;;  %v1353_v24 = vpop.eup %1352 }
 0x8ac   : > { %v1355_v25 = vpop.eup %1354  ;;  %v906_v26 = vadd.f32 1.0, %v1353_v24 }
 0x8ad   : > { %936 = vrot.lane.b32.xlu0 %v1177_v5, %s1517_s17  ;;  %v1178_v6 = vadd.f32 -1.0, %v919_v21  ;;  %v908_v27 = vadd.f32 1.0, %v1355_v25 }
 0x8ae   : > { %1356 = vrcp.f32 %v906_v26 }
 0x8af   : > { %938 = vrot.lane.b32.xlu1 %v1178_v6, %s1517_s17  ;;  %1358 = vrcp.f32 %v908_v27 }
 0x8b1   : > { %926 = vrot.lane.b32.xlu0 %v922_v22, %s1517_s17 }
 0x8b3   : > { %928 = vrot.lane.b32.xlu1 %v923_v7, %s1517_s17 }
 0x8b8   : > { %v1357_v28 = vpop.eup %1356 }
 0x8b9   : > { %v1359_v31 = vpop.eup %1358 }
 0x91f   : > { %v937_v29 = vpop.permute.xlu0 %936 }
 0x920   : > { %v942_v30 = vmul.f32 %v1357_v28, %v937_v29 }
 0x921   : > { %v939_v32 = vpop.permute.xlu1 %938 }
 0x922   : > { %v943_v33 = vmul.f32 %v1359_v31, %v939_v32  ;;  %946 = vrot.lane.b32.xlu0 %v942_v30, %s1517_s17 }
 0x923   : > { %v927_v34 = vpop.permute.xlu0 %926 }
 0x924   : > { %948 = vrot.lane.b32.xlu1 %v943_v33, %s1517_s17  ;;  %v932_v36 = vmul.f32 %v1357_v28, %v927_v34 }
 0x925   : > { %v929_v35 = vpop.permute.xlu1 %928 }
 0x926   : > { %v933_v38 = vmul.f32 %v1359_v31, %v929_v35 }
 0x994   : > { %v947_v37 = vpop.permute.xlu0 %946 }
 0x995   : > { %v952_v39 = vadd.f32 %v947_v37, %v932_v36 }
 0x996   : > { %v949_v40 = vpop.permute.xlu1 %948 }
 0x997   : > { %1360 = vtanh.f32 %v952_v39  ;;  %v953_v41 = vadd.f32 %v949_v40, %v933_v38 }
 0x999   : > { %1362 = vtanh.f32 %v953_v41 }
 0x9a1   : > { %v1361_v42 = vpop.eup %1360 }
 0x9a2   : > { %958 = vrot.lane.b32.xlu0 %v1361_v42, %s1517_s17 }
 0x9a3   : > { %v1363_v43 = vpop.eup %1362 }
 0x9a4   : > { %960 = vrot.lane.b32.xlu1 %v1363_v43, %s1517_s17 }
 0x9a6   : > { %968 = vrot.lane.b32.xlu0 %v952_v39, %s1517_s17 }
 0x9a8   : > { %970 = vrot.lane.b32.xlu1 %v953_v41, %s1517_s17 }
 0xa14   : > { %v959_v44 = vpop.permute.xlu0 %958 }
 0xa15   : > { %v964_v45 = vmul.f32 %v1349_v19, %v959_v44 }
 0xa16   : > { %v961_v46 = vpop.permute.xlu1 %960 }
 0xa17   : > { %1179 = vst.msk [vmem:[%s1708_s21 + $0x30] sm:$0xff] %vm265_vm1, %v964_v45  ;;  %v965_v47 = vmul.f32 %v1351_v20, %v961_v46 }
 0xa18   : > { %v969_v48 = vpop.permute.xlu0 %968 }
 0xa19   : > { %v976_v49 = vpack.c.bf16 %v965_v47, %v964_v45  ;;  %1180 = vst.msk [vmem:[%s1708_s21 + $0x38] sm:$0xff] %vm265_vm1, %v965_v47  ;;  %974 = vst.msk [vmem:[#allocation3] sm:$0xff] %vm265_vm1, %v969_v48 }
 0xa1a   : > { %v971_v50 = vpop.permute.xlu1 %970 }
 0xa1b   : > { %1435 = shalt.err (!%p1432_p9)
}
 0xa1c   : > { %s1436_s3 = scalar_lea.hbm %s1835_s5, 1024  ;;  %s1440_s27 = scalar_lea.hbm %s1895_s2, 2048 }
 0xa1d   : > { %p1437_p1 = scmp.ne.s32.totalorder %s1835_s5, %s1436_s3  ;;  %p1441_p7 = scmp.lt.u32.totalorder %s1835_s5, %s1895_s2 }
 0xa1e   : > { %p1442_p13 = scmp.lt.u32.totalorder %s1440_s27, %s1436_s3  ;;  %p1444_p6 = scmp.lt.u32.totalorder %s1436_s3, %s1835_s5 }
 0xa1f   : > { %p1438_p2 = pnand %p1437_p1, %p1635_p10 }
 0xa20   : > { %p1443_p4 = por %p1442_p13, %p1441_p7 }
 0xa21   : > { %p1439_p3 = pneg %p1438_p2 }
 0xa22   : > { %p1445_p8 = por %p1444_p6, %p1443_p4 }
 0xa24   : > { %p1446_p12 = pnand %p1445_p8, %p1439_p3 }
 0xa26   : > { %1449 = shalt.err (!%p1446_p12)
}
 0xa27   : > { %s1519_s21 = smov 128   ;;  %s1520_s17 = smov 8   ;;  %977 = vst.msk [vmem:[#allocation2] sm:$0xff] %vm265_vm1, %v976_v49  ;;  %975 = vst.msk [vmem:[#allocation3 + $0x8] sm:$0xff] %vm265_vm1, %v971_v50 }
 0xa28   : > { %1197 = dma.vmem_to_hbm [thread:$0]  (%p1635_p10), %s1837_s6, 1024, %s1835_s5, %s982_s12, %s1519_s21, %s1519_s21, %s1520_s17  }
 0xa29 PF: > { %s1013_s19 = sand.u32 1, %s1488_s9   ;;  %p1913_p11 = scmp.ne.s32.totalorder %s1903_s20, 0 }
 0xa2a   : > { %p1914_p0 = scmp.ge.s32.totalorder %s1508_s14, 2  ;;  %s1014_s7 = scalar_lea.sflag [#allocation6], %s1013_s19 }
 0xa2c   : > { %p1208_p5 = pnand %p1914_p0, %p1913_p11 }
 0xa2e   : > { %1483 = dma.done.wait (!%p1208_p5), %s1014_s7, 1024  }
 0xa2f   : > { %1485 = vsyncadd (!%p1208_p5), %s1014_s7, 4294966272  ;;  %s19_s14 = sadd.s32 1, %s1508_s14   ;;  %s1915_s9 = smov %s1492_s10 }
 0xa30   : > { %p16_p9 = scmp.ge.s32.totalorder %s19_s14, 4   ;;  %s1916_s10 = smov %s1496_s11 }
 0xa31   : > { %s1917_s11 = smov %s1644_s28  ;;  %s1918_s12 = smov %s1504_s13 }
 0xa32   : > { %s1919_s13 = smov %s1921_s25  ;;  %18 = sbr.rel (!%p16_p9) target bundleno = 7 (0x7), region = 87 }
 0xa39   :  { %1019 = vsyncpa [#allocation5], 1 }
 0xa3a   :  { %1021 = vsyncpa [#allocation5 + $0x1], 1 }
 0xa3b   :  { %1022 = vsyncpa [#allocation8], 1 }
 0xa3c   :  { %1023 = vsyncpa [#allocation6], 1 }
 0xa3d   :  { %1025 = vsyncpa [#allocation6 + $0x1], 1 }

</bundles_post_ra>
